<compile_context>
chip_gen: v7x
topology: tpu7x:2x2x1
jax: 0.10.0
libtpu: 0.0.40
codegen_flags: <defaults>
</compile_context>

<pallas_src>
import jax
import jax.numpy as jnp
from jax.experimental import pallas as pl
from jax.experimental.pallas import tpu as pltpu


def _hw_defaults():
    """Generation-aware defaults (v5e/v6e: 128 MiB VMEM, 1 TC; v7x: 64 MiB, 2 TCs)."""
    vmem_cap = 128 << 20
    try:
        vmem_cap = int(pltpu.get_tpu_info().vmem_capacity_bytes)
    except Exception:
        pass
    kind = ""
    try:
        kind = jax.devices()[0].device_kind.lower()
    except Exception:
        pass
    small_vmem = vmem_cap <= (64 << 20)
    is_v7 = ("v7" in kind) or small_vmem
    is_v5e = ("v5 lite" in kind) or ("v5e" in kind)
    n_tc = 2 if is_v7 else 1
    if vmem_cap >= (96 << 20):                 # v5e / v6e class: 128 MiB physical VMEM
        vmem_limit = 96 << 20
        target_block = 6 << 20
    else:                                      # v7x class: 64 MiB per TensorCore
        vmem_limit = (vmem_cap * 5) // 8       # ~40 MiB on a 64 MiB part
        target_block = 3 << 20
    return {"vmem_limit": vmem_limit, "target_block": target_block,
            "n_tc": n_tc, "is_v5e": is_v5e}


def _frn_fused_kernel(inv_s, eps, compute_dtype):
    """Single-pass: one (row_tile, S) block per grid step."""
    compute_dtype = jnp.dtype(compute_dtype)
    f32_path = compute_dtype == jnp.dtype(jnp.float32)

    def kernel(p_ref, x_ref, o_ref):
        # p_ref: (row_tile, 3) f32 -- columns (gamma, beta, tau)
        # x_ref / o_ref: (row_tile, S)
        p = p_ref[...]
        g, b, t = p[:, 0:1], p[:, 1:2], p[:, 2:3]
        x = x_ref[...]
        xf = x.astype(jnp.float32)
        # mean over the true spatial size S; lane-tail masking handled by Mosaic
        nu2 = jnp.sum(xf * xf, axis=-1, keepdims=True) * inv_s
        scale = jax.lax.rsqrt(nu2 + eps) * g          # gamma folded into scale (rsqrt -> EUP)
        if f32_path:
            y = xf * scale + b
            o_ref[...] = jnp.maximum(y, t).astype(o_ref.dtype)
        else:
            y = (x.astype(compute_dtype) * scale.astype(compute_dtype)
                 + b.astype(compute_dtype))
            o_ref[...] = jnp.maximum(y, t.astype(compute_dtype)).astype(o_ref.dtype)

    return kernel


def _nu2_kernel(inv_s, s_tile, s_total, need_mask):
    """Two-pass, pass 1: per-row mean(x^2) with a spatial reduction grid axis."""

    def kernel(x_ref, nu2_ref, acc_ref):
        j = pl.program_id(1)

        @pl.when(j == 0)
        def _():
            acc_ref[...] = jnp.zeros_like(acc_ref)

        xf = x_ref[...].astype(jnp.float32)
        if need_mask:  # last spatial block overhangs the array: zero its tail columns
            col = jax.lax.broadcasted_iota(jnp.int32, xf.shape, 1) + j * s_tile
            xf = jnp.where(col < s_total, xf, 0.0)
        acc_ref[...] += jnp.sum(xf * xf, axis=-1, keepdims=True)

        @pl.when(j == pl.num_programs(1) - 1)
        def _():
            nu2_ref[...] = acc_ref[...] * inv_s

    return kernel


def _apply_kernel(eps, compute_dtype):
    """Two-pass, pass 2: elementwise normalize + affine + threshold."""
    compute_dtype = jnp.dtype(compute_dtype)
    f32_path = compute_dtype == jnp.dtype(jnp.float32)

    def kernel(p_ref, nu2_ref, x_ref, o_ref):
        p = p_ref[...]
        g, b, t = p[:, 0:1], p[:, 1:2], p[:, 2:3]
        scale = jax.lax.rsqrt(nu2_ref[...] + eps) * g
        x = x_ref[...]
        if f32_path:
            y = x.astype(jnp.float32) * scale + b
            o_ref[...] = jnp.maximum(y, t).astype(o_ref.dtype)
        else:
            y = (x.astype(compute_dtype) * scale.astype(compute_dtype)
                 + b.astype(compute_dtype))
            o_ref[...] = jnp.maximum(y, t.astype(compute_dtype)).astype(o_ref.dtype)

    return kernel


def filter_response_norm(x, gamma, beta, tau, eps=1e-6,
                         target_block_bytes=None, vmem_limit_bytes=None,
                         force_two_pass=False, two_pass_s_tile=None):
    """x: (N, C, D, H, W); gamma/beta/tau: (1, C, 1, 1, 1)."""
    eps = abs(float(eps))                       # mirrors self.eps.abs()
    N, C, D, H, W = x.shape
    R = N * C
    S = D * H * W
    inv_s = 1.0 / float(S)

    hw = _hw_defaults()
    if target_block_bytes is None:
        target_block_bytes = hw["target_block"]
    if vmem_limit_bytes is None:
        vmem_limit_bytes = hw["vmem_limit"]
    n_tc = hw["n_tc"]

    itemsize = jnp.dtype(x.dtype).itemsize
    sub = max(8, 32 // max(itemsize, 1))        # sublane packing: f32->8, bf16->16
    compute_dtype = (x.dtype if (x.dtype == jnp.bfloat16 and not hw["is_v5e"])
                     else jnp.float32)

    # ---- free 2-D views; no pad / slice HLOs around the kernel ----
    x2d = x.reshape(R, S)
    # per-row (gamma, beta, tau) packed into one (R, 3) f32 array; row n*C + c -> channel c
    g_r = jnp.tile(gamma.reshape(C), (N,)).astype(jnp.float32)
    b_r = jnp.tile(beta.reshape(C), (N,)).astype(jnp.float32)
    t_r = jnp.tile(tau.reshape(C), (N,)).astype(jnp.float32)
    p2d = jnp.stack([g_r, b_r, t_r], axis=-1)   # (R, 3)

    # ---- single-pass feasibility: does one (rows, S) block fit in VMEM? ----
    s_lanes = pl.cdiv(S, 128) * 128             # physical lane padding of one block row
    per_row_bytes = (4 * s_lanes * itemsize     # x + out, double-buffered
                     + 3 * s_lanes * 4          # f32 intermediates headroom
                     + 2 * 128 * 4 + 1024)      # params block + slack
    budget = int(vmem_limit_bytes * 0.85)       # leave room for Mosaic internal scratch
    fit_rows = budget // per_row_bytes
    use_two_pass = force_two_pass or (fit_rows < min(sub, R))

    def _cparams(sem):
        return pltpu.CompilerParams(dimension_semantics=sem,
                                    vmem_limit_bytes=vmem_limit_bytes)

    if not use_two_pass:
        if R <= sub:
            row_tile = R                                    # full-dim row block
        else:
            row_cap = (R // sub) * sub                      # keep block_shape <= array shape
            rows_budget = max(sub, (target_block_bytes // (s_lanes * itemsize))
                              // sub * sub)
            row_tile = max(sub, min(rows_budget, (fit_rows // sub) * sub, row_cap))
            if n_tc >= 2:                                   # megacore: >= 2 steps per TC
                min_steps = 2 * n_tc
                if row_cap >= min_steps * sub:
                    row_tile = min(row_tile,
                                   max((row_cap // min_steps) // sub * sub, sub))
        grid = (pl.cdiv(R, row_tile),)

        out2d = pl.pallas_call(
            _frn_fused_kernel(inv_s, eps, compute_dtype),
            out_shape=jax.ShapeDtypeStruct((R, S), x.dtype),
            grid_spec=pltpu.PrefetchScalarGridSpec(
                num_scalar_prefetch=0,
                grid=grid,
                in_specs=[
                    pl.BlockSpec((row_tile, 3), lambda i: (i, 0)),   # packed params per tile
                    pl.BlockSpec((row_tile, S), lambda i: (i, 0)),   # lane-dense input rows
                ],
                out_specs=pl.BlockSpec((row_tile, S), lambda i: (i, 0)),
            ),
            compiler_params=_cparams(("parallel",)),
        )(p2d, x2d)
        return out2d.reshape(N, C, D, H, W)

    # ---- two-pass path (very large D*H*W): reduce, then normalize ----
    row_tile = R if R <= sub else sub
    if two_pass_s_tile is not None:
        s_tile = int(two_pass_s_tile)
    else:
        s_tile = max(128, (target_block_bytes // (row_tile * itemsize)) // 128 * 128)
    if s_tile >= S:
        s_tile = S                              # full-dim block; lane tail masked by Mosaic
    need_mask = (s_tile != S) and (S % s_tile != 0)
    grid2 = (pl.cdiv(R, row_tile), pl.cdiv(S, s_tile))

    nu2 = pl.pallas_call(
        _nu2_kernel(inv_s, s_tile, S, need_mask),
        out_shape=jax.ShapeDtypeStruct((R, 1), jnp.float32),
        grid_spec=pltpu.PrefetchScalarGridSpec(
            num_scalar_prefetch=0,
            grid=grid2,
            in_specs=[pl.BlockSpec((row_tile, s_tile), lambda i, j: (i, j))],
            out_specs=pl.BlockSpec((row_tile, 1), lambda i, j: (i, 0)),
            scratch_shapes=[pltpu.VMEM((row_tile, 1), jnp.float32)],
        ),
        compiler_params=_cparams(("parallel", "arbitrary")),
    )(x2d)

    out2d = pl.pallas_call(
        _apply_kernel(eps, compute_dtype),
        out_shape=jax.ShapeDtypeStruct((R, S), x.dtype),
        grid_spec=pltpu.PrefetchScalarGridSpec(
            num_scalar_prefetch=0,
            grid=grid2,
            in_specs=[
                pl.BlockSpec((row_tile, 3), lambda i, j: (i, 0)),
                pl.BlockSpec((row_tile, 1), lambda i, j: (i, 0)),
                pl.BlockSpec((row_tile, s_tile), lambda i, j: (i, j)),
            ],
            out_specs=pl.BlockSpec((row_tile, s_tile), lambda i, j: (i, j)),
        ),
        compiler_params=_cparams(("parallel", "parallel")),
    )(p2d, nu2, x2d)
    return out2d.reshape(N, C, D, H, W)


def _reference(x, gamma, beta, tau, eps=1e-6):
    xf = x.astype(jnp.float32)
    nu2 = jnp.mean(xf * xf, axis=(2, 3, 4), keepdims=True)
    xn = xf * jax.lax.rsqrt(nu2 + abs(eps))
    return jnp.maximum(gamma * xn + beta, tau).astype(x.dtype)


if __name__ == "__main__":
    key = jax.random.PRNGKey(0)
    k1, k2, k3, kg, kb, kt = jax.random.split(key, 6)

    # 1) default parameters (gamma=1, beta=0, tau=0) on an aligned shape
    N, C, D, H, W = 2, 4, 4, 8, 8
    x = jax.random.normal(k1, (N, C, D, H, W), dtype=jnp.float32)
    gamma = jnp.ones((1, C, 1, 1, 1), jnp.float32)
    beta = jnp.zeros((1, C, 1, 1, 1), jnp.float32)
    tau = jnp.zeros((1, C, 1, 1, 1), jnp.float32)
    out = jax.block_until_ready(filter_response_norm(x, gamma, beta, tau, eps=1e-6))
    assert out.shape == (N, C, D, H, W)
    assert jnp.allclose(out, _reference(x, gamma, beta, tau), atol=1e-5, rtol=1e-5)

    # 2) non-trivial per-channel params on a ragged shape (R=15 rows, S=126 lanes):
    #    exercises the edge-masked single-pass path (no pad / slice HLOs).
    N, C, D, H, W = 3, 5, 3, 6, 7
    x2 = jax.random.normal(k2, (N, C, D, H, W), dtype=jnp.float32)
    gamma2 = jax.random.normal(kg, (1, C, 1, 1, 1), jnp.float32)
    beta2 = jax.random.normal(kb, (1, C, 1, 1, 1), jnp.float32)
    tau2 = jax.random.normal(kt, (1, C, 1, 1, 1), jnp.float32)
    out2 = jax.block_until_ready(filter_response_norm(x2, gamma2, beta2, tau2))
    assert jnp.allclose(out2, _reference(x2, gamma2, beta2, tau2), atol=1e-5, rtol=1e-5)

    # 3) forced two-pass fallback (reduce-then-normalize) with a masked tail
    #    spatial block: S = 320 -> 3 spatial blocks of 128, last one partial.
    N, C, D, H, W = 3, 5, 4, 8, 10
    x3 = jax.random.normal(k3, (N, C, D, H, W), dtype=jnp.float32)
    out3 = jax.block_until_ready(
        filter_response_norm(x3, gamma2, beta2, tau2,
                             force_two_pass=True, two_pass_s_tile=128))
    assert jnp.allclose(out3, _reference(x3, gamma2, beta2, tau2), atol=1e-5, rtol=1e-5)

    print("KERNEL_OK")
</pallas_src>

<mosaic_0001>
module attributes {stable_mosaic.version = 11 : i64} {
  func.func @kernel(%arg0: i32, %arg1: memref<8x3xf32, #tpu.memory_space<vmem>>, %arg2: memref<8x256xf32, #tpu.memory_space<vmem>>, %arg3: memref<8x256xf32, #tpu.memory_space<vmem>>) attributes {dimension_semantics = [#tpu.dimension_semantics<parallel>], iteration_bounds = array<i64: 1>, scalar_prefetch = 0 : i64, scratch_operands = 0 : i64, tpu.core_type = #tpu.core_type<tc>, window_params = [{transform_indices = @transform_0, window_bounds = array<i64: 8, 3>}, {transform_indices = @transform_1, window_bounds = array<i64: 8, 256>}, {transform_indices = @transform_2, window_bounds = array<i64: 8, 256>}]} {
    %c0 = arith.constant 0 : index
    %c0_0 = arith.constant 0 : index
    %0 = vector.load %arg1[%c0, %c0_0] : memref<8x3xf32, #tpu.memory_space<vmem>>, vector<8x3xf32>
    %1 = vector.extract_strided_slice %0 {offsets = [0, 0], sizes = [8, 1], strides = [1, 1]} : vector<8x3xf32> to vector<8x1xf32>
    %2 = vector.extract_strided_slice %0 {offsets = [0, 1], sizes = [8, 1], strides = [1, 1]} : vector<8x3xf32> to vector<8x1xf32>
    %3 = vector.extract_strided_slice %0 {offsets = [0, 2], sizes = [8, 1], strides = [1, 1]} : vector<8x3xf32> to vector<8x1xf32>
    %c0_1 = arith.constant 0 : index
    %c0_2 = arith.constant 0 : index
    %4 = vector.load %arg2[%c0_1, %c0_2] : memref<8x256xf32, #tpu.memory_space<vmem>>, vector<8x256xf32>
    %5 = arith.mulf %4, %4 : vector<8x256xf32>
    %cst = arith.constant dense<0.000000e+00> : vector<8xf32>
    %6 = vector.multi_reduction <add>, %5, %cst [1] : vector<8x256xf32> to vector<8xf32>
    %7 = vector.shape_cast %6 : vector<8xf32> to vector<8x1xf32>
    %cst_3 = arith.constant 3.906250e-03 : f32
    %8 = vector.broadcast %cst_3 : f32 to vector<8x1xf32>
    %9 = arith.mulf %7, %8 : vector<8x1xf32>
    %cst_4 = arith.constant 9.99999997E-7 : f32
    %10 = vector.broadcast %cst_4 : f32 to vector<8x1xf32>
    %11 = arith.addf %9, %10 : vector<8x1xf32>
    %12 = math.rsqrt %11 : vector<8x1xf32>
    %13 = arith.mulf %12, %1 : vector<8x1xf32>
    %14 = vector.broadcast %13 : vector<8x1xf32> to vector<8x256xf32>
    %15 = arith.mulf %4, %14 : vector<8x256xf32>
    %16 = vector.broadcast %2 : vector<8x1xf32> to vector<8x256xf32>
    %17 = arith.addf %15, %16 : vector<8x256xf32>
    %18 = vector.broadcast %3 : vector<8x1xf32> to vector<8x256xf32>
    %19 = arith.maximumf %17, %18 : vector<8x256xf32>
    %c0_5 = arith.constant 0 : index
    %c0_6 = arith.constant 0 : index
    %20 = vector.load %arg3[%c0_5, %c0_6] : memref<8x256xf32, #tpu.memory_space<vmem>>, vector<8x256xf32>
    tpu.vector_store %arg3[%c0_5, %c0_6], %19 {strides = array<i32>} : memref<8x256xf32, #tpu.memory_space<vmem>>, vector<8x256xf32>,
    return
  }
  func.func @transform_0(%arg0: i32) -> (i32, i32) {
    %c0_i32 = arith.constant 0 : i32
    %c0_i32_0 = arith.constant 0 : i32
    return %arg0, %c0_i32 : i32, i32
  }
  func.func @transform_1(%arg0: i32) -> (i32, i32) {
    %c0_i32 = arith.constant 0 : i32
    %c0_i32_0 = arith.constant 0 : i32
    return %arg0, %c0_i32 : i32, i32
  }
  func.func @transform_2(%arg0: i32) -> (i32, i32) {
    %c0_i32 = arith.constant 0 : i32
    %c0_i32_0 = arith.constant 0 : i32
    return %arg0, %c0_i32 : i32, i32
  }
}

</mosaic_0001>

<bundles_post_ra>
// kernel: tpu_custom_call.1
= control target key start
LH: loop header
LB: loop body
LE: loop exit
PB: predicated region body
PF: predicated region fallthrough
CT: control target
= control target key end

     0   :  { %7 = vsyncpa [#allocation3], 0  ;;  %s227_s0 = inlined_call_operand.hbm [shape: f32[8,3], index: 0, kind: input, shape index: {}]   ;;  %s228_s1 = inlined_call_operand.hbm [shape: f32[8,256], index: 1, kind: input, shape index: {}]   ;;  %s229_s2 = inlined_call_operand.hbm [shape: f32[8,256], index: 2, kind: output, shape index: {}]  }
   0x1   :  { %8 = vsyncpa [#allocation6], 0 }
   0x2   :  { %9 = vsyncpa [#allocation4], 0  ;;  %s170_s9 = smov [#allocation2]   ;;  %s171_s11 = smov [#allocation5]  }
   0x3   :  { %s16_s10 = sshll.u32 %s170_s9, 4  ;;  %s26_s12 = sshll.u32 %s171_s11, 4  ;;  %s17_s10 = int_to_ptr.vmem [resolvable:$true] %s16_s10  ;;  %s27_s12 = int_to_ptr.vmem [resolvable:$true] %s26_s12 }
   0x4   :  { %s98_s15 = scalar_lea.hbm %s227_s0, 128 }
   0x5   :  { %p99_p0 = scmp.ne.s32.totalorder %s227_s0, %s98_s15  ;;  %p102_p1 = scmp.lt.u32.totalorder %s98_s15, %s227_s0 }
   0x7   :  { %p104_p2 = pnand %p102_p1, %p99_p0 }
   0x9   :  { %107 = shalt.err (!%p104_p2)
}
   0xa   :  { %s108_s20 = scalar_lea.vmem %s17_s10, 128  ;;  %p113_p4 = scmp.lt.s32.totalorder %s17_s10, %s17_s10 }
   0xb   :  { %p109_p3 = scmp.ne.s32.totalorder %s17_s10, %s108_s20  ;;  %p114_p5 = scmp.lt.s32.totalorder %s108_s20, %s108_s20 }
   0xd   :  { %p115_p6 = por %p114_p5, %p113_p4 }
   0xf   :  { %p116_p7 = pnand %p115_p6, %p109_p3 }
  0x11   :  { %119 = shalt.err (!%p116_p7)
}
  0x12   :  { %19 = dma.hbm_to_vmem [thread:$0]  %s227_s0, 128, %s17_s10, [#allocation3]  }
  0x13   :  { %s120_s25 = scalar_lea.hbm %s228_s1, 256 }
  0x14   :  { %p121_p8 = scmp.ne.s32.totalorder %s228_s1, %s120_s25  ;;  %p124_p9 = scmp.lt.u32.totalorder %s120_s25, %s228_s1 }
  0x16   :  { %p126_p10 = pnand %p124_p9, %p121_p8 }
  0x18   :  { %129 = shalt.err (!%p126_p10)
}
  0x19   :  { %s130_s30 = scalar_lea.vmem %s27_s12, 256  ;;  %p135_p12 = scmp.lt.s32.totalorder %s27_s12, %s27_s12 }
  0x1a   :  { %p131_p11 = scmp.ne.s32.totalorder %s27_s12, %s130_s30  ;;  %p136_p13 = scmp.lt.s32.totalorder %s130_s30, %s130_s30 }
  0x1c   :  { %p137_p0 = por %p136_p13, %p135_p12 }
  0x1e   :  { %p138_p1 = pnand %p137_p0, %p131_p11 }
  0x20   :  { %141 = shalt.err (!%p138_p1)
}
  0x21   :  { %29 = dma.hbm_to_vmem [thread:$0]  %s228_s1, 256, %s27_s12, [#allocation6]  }
  0x22   :  { %164 = dma.done.wait [#allocation3], 128  }
  0x23   :  { %165 = vsyncadd [#allocation3], 4294967168 }
  0x24   :  { %166 = dma.done.wait [#allocation6], 256  }
  0x25   :  { %167 = vsyncadd [#allocation6], 4294967040  ;;  %v37_v0 = vld [vmem:[#allocation5] sm:$0xff]  ;;  %v38_v1 = vld [vmem:[#allocation5 + $0x8] sm:$0xff]  ;;  %v172_v6 = vmov 1   ;;  %v173_v7 = vmov 0  }
  0x26   :  { %v39_v2 = vmul.f32 %v37_v0, %v37_v0  ;;  %v40_v3 = vmul.f32 %v38_v1, %v38_v1  ;;  %v36_v5 = vld [vmem:[#allocation2] sm:$0xff]  ;;  %93 = vset.pattern.permute.xlu1 %v172_v6  ;;  %92 = vset.pattern.permute.xlu0 %v173_v7  ;;  %v174_v8 = vmov 2   ;;  %s175_s1 = smov [#allocation7]  }
  0x27   :  { %57 = vperm.xlu1 %93, %v36_v5   ;;  %s76_s4 = sshll.u32 %s175_s1, 4  ;;  %s77_s4 = int_to_ptr.vmem [resolvable:$true] %s76_s4 }
  0x28   :  { %v41_v4 = vadd.f32 %v40_v3, %v39_v2  ;;  %s142_s5 = scalar_lea.vmem %s77_s4, 256  ;;  %p147_p3 = scmp.lt.s32.totalorder %s77_s4, %s77_s4 }
  0x29   :  { %p143_p2 = scmp.ne.s32.totalorder %s77_s4, %s142_s5  ;;  %p148_p4 = scmp.lt.s32.totalorder %s142_s5, %s142_s5 }
  0x2a   :  { %42 = vadd.xlane.f32.xlu0 %v41_v4 }
  0x2b   :  { %94 = vset.pattern.permute.xlu1 %v174_v8  ;;  %p149_p5 = por %p148_p4, %p147_p3 }
  0x2c   :  { %63 = vperm.xlu1 %94, %v36_v5  }
  0x2d   :  { %p150_p6 = pnand %p149_p5, %p143_p2 }
  0xa6   :  { %v58_v14 = vpop.permute.xlu1 %57 }
  0xab   :  { %v64_v18 = vpop.permute.xlu1 %63 }
  0xb7   :  { %v43_v9 = vpop.xlane.xlu0 %42 }
  0xb8   :  { %v44_v10 = vmul.f32 0.00390625, %v43_v9 }
  0xba   :  { %v45_v11 = vadd.f32 1e-06, %v44_v10 }
  0xbc   :  { %96 = vrsqrt.f32 %v45_v11 }
  0xc6   :  { %v97_v12 = vpop.eup %96 }
  0xc7   :  { %v47_v13 = vmul.f32 %v97_v12, %v36_v5 }
  0xc9   :  { %50 = vperm.xlu0 %92, %v47_v13  }
  0xcd   :  { %95 = vset.pattern.permute.xlu0 %v174_v8 }
 0x148   :  { %v51_v15 = vpop.permute.xlu0 %50 }
 0x149   :  { %v53_v16 = vmul.f32 %v51_v15, %v37_v0  ;;  %v54_v17 = vmul.f32 %v51_v15, %v38_v1 }
 0x14b   :  { %v60_v19 = vadd.f32 %v58_v14, %v53_v16  ;;  %v61_v20 = vadd.f32 %v58_v14, %v54_v17 }
 0x14d   :  { %v66_v21 = vmax.f32 %v60_v19, %v64_v18  ;;  %v67_v22 = vmax.f32 %v61_v20, %v64_v18 }
 0x14f   :  { %68 = vst [vmem:[#allocation7] sm:$0xff] %v66_v21  ;;  %69 = vst [vmem:[#allocation7 + $0x8] sm:$0xff] %v67_v22 }
 0x150   :  { %153 = shalt.err (!%p150_p6)
}
 0x151   :  { %s154_s8 = scalar_lea.hbm %s229_s2, 256 }
 0x152   :  { %p155_p7 = scmp.ne.s32.totalorder %s229_s2, %s154_s8  ;;  %p158_p8 = scmp.lt.u32.totalorder %s154_s8, %s229_s2 }
 0x154   :  { %p160_p9 = pnand %p158_p8, %p155_p7 }
 0x156   :  { %163 = shalt.err (!%p160_p9)
}
 0x157   :  { %79 = dma.vmem_to_hbm [thread:$0]  %s77_s4, 256, %s229_s2, [#allocation4]  }
 0x158   :  { %168 = dma.done.wait [#allocation4], 256  }
 0x159   :  { %169 = vsyncadd [#allocation4], 4294967040 }
 0x15a   :  { %83 = vsyncpa [#allocation3], 1 }
 0x15b   :  { %84 = vsyncpa [#allocation6], 1 }
 0x15c   :  { %85 = vsyncpa [#allocation4], 1 }

</bundles_post_ra>
